<compile_context>
chip_gen: v7x
topology: tpu7x:2x2x1
jax: 0.10.0
libtpu: 0.0.40
codegen_flags: <defaults>
</compile_context>

<pallas_src>
import jax
import jax.numpy as jnp
from jax.experimental import pallas as pl
from jax.experimental.pallas import tpu as pltpu


def _round_up(x, m):
    return ((x + m - 1) // m) * m


def cnn_kernel(x_ref, wtoe_ref, bconv_ref, wfc_ref, bfc_ref, out_ref):
    # x_ref:     (Bt, L*Cin)         f32   row-flattened NLC activations (col = l*Cin + cin)
    # wtoe_ref:  (L*Cin, Lout*Cout)  f32   block-Toeplitz conv weight (col = lo*Cout + co)
    # bconv_ref: (1, Cout)           f32
    # wfc_ref:   (Cout, Odim_pad)    f32   pre-transposed, lane-dense padded
    # bfc_ref:   (1, Odim_pad)       f32
    # out_ref:   (Bt, Odim_pad)      f32
    Cout = bconv_ref.shape[1]

    # ---- Conv1d as ONE plain (M,K)x(K,N) MXU contraction ----
    conv = jnp.dot(x_ref[...], wtoe_ref[...],
                   preferred_element_type=jnp.float32)          # (Bt, Lout*Cout)

    # ---- MaxPool1d(kernel_size=2) over time, then bias + ReLU ----
    # Pooled length is 1 (asserted in the wrapper), so the pool is a single pairwise max
    # over the two adjacent Cout-wide lane slices; any trailing odd step is dropped, as
    # in torch.  Bias is time-invariant and ReLU is monotone, so pooling first is
    # bit-identical to torch's relu -> pool order.
    h = jnp.maximum(conv[:, :Cout], conv[:, Cout:2 * Cout])     # (Bt, Cout)
    h = jnp.maximum(h + bconv_ref[...], 0.0)

    # ---- Linear: h @ Wfc (pre-transposed, padded) + bfc ----
    out = jnp.dot(h, wfc_ref[...], preferred_element_type=jnp.float32)
    out_ref[...] = out + bfc_ref[...]


def make_cnn_forward(wconv, bconv, wfc, bfc, seq_len, dtype=jnp.float32):
    """Prepare weights once (hoisted out of the per-call path) and return a jitted
    forward(x_ncl) -> (B, Odim) float32, where x_ncl is (B, Cin, L) like PyTorch NCL."""
    Cout, Cin, K = wconv.shape
    Odim, Cout_fc = wfc.shape
    L = int(seq_len)
    Lout = L - K + 1
    P = Lout // 2
    # The module's fc = Linear(num_channels, output_dim) only typechecks when the pooled
    # length is 1; for P > 1 torch's .view(B, -1) flatten order would also differ.
    assert P == 1 and P * Cout == Cout_fc, (
        "fc expects num_channels features -> pooled length must be exactly 1")

    # ---- block-Toeplitz conv weight: (L*Cin, Lout*Cout) ----
    # T[l*Cin + cin, lo*Cout + co] = wconv[co, cin, l - lo] if 0 <= l - lo < K else 0
    mid = jnp.transpose(wconv, (2, 1, 0)).reshape(K * Cin, Cout).astype(dtype)
    col_blocks = []
    for lo in range(Lout):
        top = jnp.zeros((lo * Cin, Cout), dtype)
        bot = jnp.zeros(((L - lo - K) * Cin, Cout), dtype)
        col_blocks.append(jnp.concatenate([top, mid, bot], axis=0))
    wtoe = jnp.concatenate(col_blocks, axis=1)                   # (L*Cin, Lout*Cout)

    # ---- fc weight / biases: lane-dense padded, pre-transposed ----
    OD_PAD = _round_up(Odim, 128)
    bconv2d = bconv.reshape(1, Cout).astype(jnp.float32)
    wfc_t = jnp.pad(wfc.T, ((0, 0), (0, OD_PAD - Odim))).astype(dtype)
    bfc_p = jnp.pad(bfc.astype(jnp.float32), (0, OD_PAD - Odim)).reshape(1, OD_PAD)

    LCin = L * Cin
    LoutCout = Lout * Cout

    @jax.jit
    def forward(x_ncl):
        B = x_ncl.shape[0]
        assert x_ncl.shape == (B, Cin, L)

        # ---- batch tiling: large tiles to amortize per-step overhead, but keep the
        # grid >= 2 whenever the batch permits so the "parallel" axis shards across
        # both TensorCores on v7x.  VMEM is never the constraint at these shapes. ----
        B_pad8 = _round_up(B, 8)
        if B_pad8 <= 8:
            b_tile = B_pad8
        else:
            b_tile = min(512, _round_up(pl.cdiv(B_pad8, 2), 8))
        B_pad = _round_up(B_pad8, b_tile)

        # NCL -> NLC -> flatten to (B, L*Cin); matches the Toeplitz row order l*Cin + cin.
        x2d = jnp.transpose(x_ncl, (0, 2, 1)).reshape(B, LCin).astype(dtype)
        if B_pad != B:
            x2d = jnp.pad(x2d, ((0, B_pad - B), (0, 0)))

        flops = 2 * B_pad * LCin * LoutCout + 2 * B_pad * Cout * OD_PAD
        bytes_accessed = (B_pad * LCin * x2d.dtype.itemsize
                          + wtoe.size * wtoe.dtype.itemsize
                          + wfc_t.size * wfc_t.dtype.itemsize
                          + bconv2d.size * 4 + bfc_p.size * 4
                          + B_pad * OD_PAD * 4)

        out_padded = pl.pallas_call(
            cnn_kernel,
            out_shape=jax.ShapeDtypeStruct((B_pad, OD_PAD), jnp.float32),
            grid_spec=pltpu.PrefetchScalarGridSpec(
                num_scalar_prefetch=0,
                grid=(B_pad // b_tile,),
                in_specs=[
                    pl.BlockSpec((b_tile, LCin), lambda b: (b, 0)),      # x: tiled over batch
                    pl.BlockSpec((LCin, LoutCout), lambda b: (0, 0)),    # Toeplitz conv weight
                    pl.BlockSpec((1, Cout), lambda b: (0, 0)),           # conv bias
                    pl.BlockSpec((Cout, OD_PAD), lambda b: (0, 0)),      # fc weight
                    pl.BlockSpec((1, OD_PAD), lambda b: (0, 0)),         # fc bias
                ],
                out_specs=pl.BlockSpec((b_tile, OD_PAD), lambda b: (b, 0)),
            ),
            compiler_params=pltpu.CompilerParams(
                dimension_semantics=("parallel",)),
            cost_estimate=pl.CostEstimate(
                flops=flops, transcendentals=0, bytes_accessed=bytes_accessed),
        )(x2d, wtoe, bconv2d, wfc_t, bfc_p)

        return out_padded[:B, :Odim]

    return forward


def cnn_model_reference(x_ncl, wconv, bconv, wfc, bfc):
    """Pure-JAX f32 reference mirroring the PyTorch forward exactly."""
    B, Cin, L = x_ncl.shape
    Cout, _, K = wconv.shape
    Lout = L - K + 1
    conv = sum(jnp.einsum('bil,oi->bol', x_ncl[:, :, k:k + Lout], wconv[:, :, k])
               for k in range(K)) + bconv[None, :, None]                 # (B, Cout, Lout)
    conv = jnp.maximum(conv, 0.0)
    P = Lout // 2
    pooled = jnp.maximum(conv[:, :, 0:2 * P:2], conv[:, :, 1:2 * P:2])   # (B, Cout, P)
    h = pooled.reshape(B, -1)                                            # torch .view(B, -1)
    return h @ wfc.T + bfc[None, :]


if __name__ == "__main__":
    # Shapes chosen so pooled length == 1 (required by the module's fc layer).
    B, Cin, L = 2, 8, 4          # batch=2, input_dim=8, seq len=4
    Cout, K = 16, 3              # num_channels=16, kernel_size=3
    Odim = 4                     # output_dim=4

    key = jax.random.PRNGKey(0)
    kx, kw1, kb1, kw2, kb2 = jax.random.split(key, 5)

    x = jax.random.normal(kx, (B, Cin, L), jnp.float32)          # NCL, like PyTorch
    wconv = jax.random.normal(kw1, (Cout, Cin, K), jnp.float32) * 0.1
    bconv = jax.random.normal(kb1, (Cout,), jnp.float32) * 0.1
    wfc = jax.random.normal(kw2, (Odim, Cout), jnp.float32) * 0.1
    bfc = jax.random.normal(kb2, (Odim,), jnp.float32) * 0.1

    # Weight prep hoisted to init; per-call path is a single jitted function.
    forward = make_cnn_forward(wconv, bconv, wfc, bfc, seq_len=L)

    out = jax.block_until_ready(forward(x))
    assert out.shape == (B, Odim)
    ref = cnn_model_reference(x, wconv, bconv, wfc, bfc)
    assert jnp.allclose(out, ref, atol=2e-3, rtol=2e-3), (out, ref)

    # Also exercise a larger batch (multi-tile grid / megacore path).
    xb = jax.random.normal(jax.random.PRNGKey(1), (300, Cin, L), jnp.float32)
    outb = jax.block_until_ready(forward(xb))
    refb = cnn_model_reference(xb, wconv, bconv, wfc, bfc)
    assert outb.shape == (300, Odim)
    assert jnp.allclose(outb, refb, atol=2e-3, rtol=2e-3)

    print("KERNEL_OK")
</pallas_src>

<mosaic_0001>
module attributes {stable_mosaic.version = 11 : i64} {
  func.func @cnn_kernel(%arg0: i32, %arg1: memref<8x32xf32, #tpu.memory_space<vmem>>, %arg2: memref<32x32xf32, #tpu.memory_space<vmem>>, %arg3: memref<1x16xf32, #tpu.memory_space<vmem>>, %arg4: memref<16x128xf32, #tpu.memory_space<vmem>>, %arg5: memref<1x128xf32, #tpu.memory_space<vmem>>, %arg6: memref<8x128xf32, #tpu.memory_space<vmem>>) attributes {dimension_semantics = [#tpu.dimension_semantics<parallel>], iteration_bounds = array<i64: 1>, scalar_prefetch = 0 : i64, scratch_operands = 0 : i64, tpu.core_type = #tpu.core_type<tc>, window_params = [{transform_indices = @transform_0, window_bounds = array<i64: 8, 32>}, {pipeline_mode = #tpu.pipeline_mode<synchronous>, transform_indices = @transform_1, window_bounds = array<i64: 32, 32>}, {pipeline_mode = #tpu.pipeline_mode<synchronous>, transform_indices = @transform_2, window_bounds = array<i64: 1, 16>}, {pipeline_mode = #tpu.pipeline_mode<synchronous>, transform_indices = @transform_3, window_bounds = array<i64: 16, 128>}, {pipeline_mode = #tpu.pipeline_mode<synchronous>, transform_indices = @transform_4, window_bounds = array<i64: 1, 128>}, {transform_indices = @transform_5, window_bounds = array<i64: 8, 128>}]} {
    %c0 = arith.constant 0 : index
    %c0_0 = arith.constant 0 : index
    %0 = vector.load %arg1[%c0, %c0_0] : memref<8x32xf32, #tpu.memory_space<vmem>>, vector<8x32xf32>
    %c0_1 = arith.constant 0 : index
    %c0_2 = arith.constant 0 : index
    %1 = vector.load %arg2[%c0_1, %c0_2] : memref<32x32xf32, #tpu.memory_space<vmem>>, vector<32x32xf32>
    %cst = arith.constant dense<0.000000e+00> : vector<8x32xf32>
    %2 = tpu.matmul %0, %1, %cst {dimension_numbers = #tpu.dot_dimension_numbers<[1], [0], [0], [1], [0, 0, 1, 1], [], []>} : vector<8x32xf32>, vector<32x32xf32>, vector<8x32xf32> -> vector<8x32xf32>
    %3 = vector.extract_strided_slice %2 {offsets = [0, 0], sizes = [8, 16], strides = [1, 1]} : vector<8x32xf32> to vector<8x16xf32>
    %4 = vector.extract_strided_slice %2 {offsets = [0, 16], sizes = [8, 16], strides = [1, 1]} : vector<8x32xf32> to vector<8x16xf32>
    %5 = arith.maximumf %3, %4 : vector<8x16xf32>
    %c0_3 = arith.constant 0 : index
    %c0_4 = arith.constant 0 : index
    %6 = vector.load %arg3[%c0_3, %c0_4] : memref<1x16xf32, #tpu.memory_space<vmem>>, vector<1x16xf32>
    %7 = vector.broadcast %6 : vector<1x16xf32> to vector<8x16xf32>
    %8 = arith.addf %5, %7 : vector<8x16xf32>
    %cst_5 = arith.constant 0.000000e+00 : f32
    %9 = vector.broadcast %cst_5 : f32 to vector<8x16xf32>
    %10 = arith.maximumf %8, %9 : vector<8x16xf32>
    %c0_6 = arith.constant 0 : index
    %c0_7 = arith.constant 0 : index
    %11 = vector.load %arg4[%c0_6, %c0_7] : memref<16x128xf32, #tpu.memory_space<vmem>>, vector<16x128xf32>
    %cst_8 = arith.constant dense<0.000000e+00> : vector<8x128xf32>
    %12 = tpu.matmul %10, %11, %cst_8 {dimension_numbers = #tpu.dot_dimension_numbers<[1], [0], [0], [1], [0, 0, 1, 1], [], []>} : vector<8x16xf32>, vector<16x128xf32>, vector<8x128xf32> -> vector<8x128xf32>
    %c0_9 = arith.constant 0 : index
    %c0_10 = arith.constant 0 : index
    %13 = vector.load %arg5[%c0_9, %c0_10] : memref<1x128xf32, #tpu.memory_space<vmem>>, vector<1x128xf32>
    %14 = vector.broadcast %13 : vector<1x128xf32> to vector<8x128xf32>
    %15 = arith.addf %12, %14 : vector<8x128xf32>
    %c0_11 = arith.constant 0 : index
    %c0_12 = arith.constant 0 : index
    %16 = vector.load %arg6[%c0_11, %c0_12] : memref<8x128xf32, #tpu.memory_space<vmem>>, vector<8x128xf32>
    tpu.vector_store %arg6[%c0_11, %c0_12], %15 {strides = array<i32>} : memref<8x128xf32, #tpu.memory_space<vmem>>, vector<8x128xf32>,
    return
  }
  func.func @transform_0(%arg0: i32) -> (i32, i32) {
    %c0_i32 = arith.constant 0 : i32
    %c0_i32_0 = arith.constant 0 : i32
    return %arg0, %c0_i32 : i32, i32
  }
  func.func @transform_1(%arg0: i32) -> (i32, i32) {
    %c0_i32 = arith.constant 0 : i32
    %c0_i32_0 = arith.constant 0 : i32
    %c0_i32_1 = arith.constant 0 : i32
    return %c0_i32, %c0_i32_0 : i32, i32
  }
  func.func @transform_2(%arg0: i32) -> (i32, i32) {
    %c0_i32 = arith.constant 0 : i32
    %c0_i32_0 = arith.constant 0 : i32
    %c0_i32_1 = arith.constant 0 : i32
    return %c0_i32, %c0_i32_0 : i32, i32
  }
  func.func @transform_3(%arg0: i32) -> (i32, i32) {
    %c0_i32 = arith.constant 0 : i32
    %c0_i32_0 = arith.constant 0 : i32
    %c0_i32_1 = arith.constant 0 : i32
    return %c0_i32, %c0_i32_0 : i32, i32
  }
  func.func @transform_4(%arg0: i32) -> (i32, i32) {
    %c0_i32 = arith.constant 0 : i32
    %c0_i32_0 = arith.constant 0 : i32
    %c0_i32_1 = arith.constant 0 : i32
    return %c0_i32, %c0_i32_0 : i32, i32
  }
  func.func @transform_5(%arg0: i32) -> (i32, i32) {
    %c0_i32 = arith.constant 0 : i32
    %c0_i32_0 = arith.constant 0 : i32
    return %arg0, %c0_i32 : i32, i32
  }
}

</mosaic_0001>

<bundles_post_ra>
// kernel: forward.1
= control target key start
LH: loop header
LB: loop body
LE: loop exit
PB: predicated region body
PF: predicated region fallthrough
CT: control target
= control target key end

     0   :  { %10 = vsyncpa [#allocation3], 0  ;;  %s286_s18 = smov [#allocation2]   ;;  %s353_s0 = inlined_call_operand.vmem [shape: f32[8,32], index: 0, kind: input, shape index: {}]   ;;  %s354_s1 = inlined_call_operand.hbm [shape: f32[32,32], index: 1, kind: input, shape index: {}]   ;;  %s355_s2 = inlined_call_operand.vmem [shape: f32[1,16], index: 2, kind: input, shape index: {}]   ;;  %s356_s3 = inlined_call_operand.vmem [shape: f32[16,128], index: 3, kind: input, shape index: {}]   ;;  %s357_s4 = inlined_call_operand.vmem [shape: f32[1,128], index: 4, kind: input, shape index: {}]   ;;  %s358_s5 = inlined_call_operand.vmem [shape: f32[8,128], index: 5, kind: output, shape index: {}]  }
   0x1   :  { %s18_s19 = sshll.u32 %s286_s18, 4  ;;  %s262_s22 = scalar_lea.hbm %s354_s1, 512  ;;  %s19_s19 = int_to_ptr.vmem [resolvable:$true] %s18_s19 }
   0x2   :  { %p263_p0 = scmp.ne.s32.totalorder %s354_s1, %s262_s22  ;;  %p266_p1 = scmp.lt.u32.totalorder %s262_s22, %s354_s1 }
   0x4   :  { %p268_p2 = pnand %p266_p1, %p263_p0 }
   0x6   :  { %271 = shalt.err (!%p268_p2)
}
   0x7   :  { %s272_s27 = scalar_lea.vmem %s19_s19, 512  ;;  %p277_p4 = scmp.lt.s32.totalorder %s19_s19, %s19_s19 }
   0x8   :  { %p273_p3 = scmp.ne.s32.totalorder %s19_s19, %s272_s27  ;;  %p278_p5 = scmp.lt.s32.totalorder %s272_s27, %s272_s27 }
   0xa   :  { %p279_p6 = por %p278_p5, %p277_p4 }
   0xc   :  { %p280_p7 = pnand %p279_p6, %p273_p3 }
   0xe   :  { %283 = shalt.err (!%p280_p7)
}
   0xf   :  { %s287_s28 = smov 128   ;;  %s288_s29 = smov 8  }
  0x10   :  { %24 = dma.hbm_to_vmem [thread:$0]  %s354_s1, 512, %s19_s19, [#allocation3], %s287_s28, %s287_s28, %s288_s29  }
  0x11   :  { %284 = dma.done.wait [#allocation3], 512  }
  0x12   :  { %285 = vsyncadd [#allocation3], 4294966784  ;;  %v289_v0 = vmov 0.0|0.0   ;;  %vm290_vm0 = vmmov 0   ;;  %v291_v1 = vmov 0.0   ;;  %v35_v2 = vld [vmem:[#allocation2] sm:$0xff] }
  0x13   :  { %246 = vmatprep.subr.bf16.mxu0 %v289_v0  ;;  %236 = vmatprep.mubr.msk.f32.mxu0 %vm290_vm0, %v291_v1  ;;  %v36_v3 = vld [vmem:[#allocation2 + $0x8] sm:$0xff]  ;;  %v37_v4 = vld [vmem:[#allocation2 + $0x10] sm:$0xff]  ;;  %v38_v6 = vld [vmem:[#allocation2 + $0x18] sm:$0xff]  ;;  %vm39_vm1 = vcmask 261120   ;;  %s292_s12 = smov 112   ;;  %vm136_vm2 = vcmask 130048  }
  0x14   :  { %252 = vmatprep.subr.bf16.mxu1 %v289_v0  ;;  %243 = vmatprep.mubr.msk.f32.mxu1 %vm290_vm0, %v291_v1  ;;  %v247_v5 = vpack.c.bf16 %v36_v3, %v35_v2  ;;  %v250_v7 = vpack.c.bf16 %v38_v6, %v37_v4  ;;  %v34_v8 = vld [vmem:[%s353_s0] sm:$0xff]  ;;  %v128_v10 = vld [vmem:[%s356_s3 + $0x8] sm:$0xff] }
  0x15   :  { %v127_v9 = vld [vmem:[%s356_s3] sm:$0xff] }
  0x16   :  { %248 = vmatpush3.bf16.msra.mxu0 %v247_v5  ;;  %v253_v11 = vpack.c.bf16 %v128_v10, %v127_v9  ;;  %v217_v15 = vld [vmem:[%s355_s2] ss:$0 sm:$0xff] }
  0x17   :  { %249 = vmatprep.subr.bf16.mxu0 %v289_v0  ;;  %v218_v19 = vld [vmem:[%s357_s4] ss:$0 sm:$0xff] }
  0x18   :  { %254 = vmatpush3.bf16.msra.mxu1 %v253_v11 }
  0x1a   :  { %251 = vmatpush3.bf16.msra.mxu0 %v250_v7 }
  0x1d   :  { %237 = vmatmul.mubr.msk.f32.vlgmr.msra.gmra.mrb[0].mxu0 %vm39_vm1, %v34_v8 }
  0xf0   :  { %v109_v12 = vpop.f32.mrb[0].mxu0 }
  0xf1   :  { %v238_v13 = vpop.f32.mrb[1].mxu0  ;;  %114 = vrot.lane.b32.xlu0 %v109_v12, %s292_s12 }
 0x163   :  { %v115_v14 = vpop.permute.xlu0 %114 }
 0x164   :  { %v117_v16 = vmax.f32 %v109_v12, %v115_v14 }
 0x166   :  { %v125_v17 = vadd.f32 %v217_v15, %v117_v16 }
 0x168   :  { %v126_v18 = vmax.f32 %v125_v17, 0.0 }
 0x16a   :  { %244 = vmatmul.mubr.msk.f32.vlgmr.msra.gmra.mrb[0].mxu1 %vm136_vm2, %v126_v18 }
 0x23d   :  { %v206_v20 = vpop.f32.mrb[0].mxu1 }
 0x23e   :  { %v207_v21 = vadd.f32 %v218_v19, %v206_v20  ;;  %v245_v22 = vpop.f32.mrb[1].mxu1 }
 0x240   :  { %210 = vst [vmem:[%s358_s5] sm:$0xff] %v207_v21 }
 0x241   :  { %215 = vsyncpa [#allocation3], 1 }

</bundles_post_ra>
